<compile_context>
chip_gen: v6e
topology: v6e:2x2x1
jax: 0.10.0
libtpu: 0.0.40
codegen_flags: <defaults>
</compile_context>

<pallas_src>
import functools

import jax
import jax.numpy as jnp
from jax.experimental import pallas as pl
from jax.experimental.pallas import tpu as pltpu

_LANE = 128
_SUBLANE = 8


def _attention_kernel(feat_ref, hid_ref, wf_ref, bf_ref, wh_ref, bh_ref,
                      wfull_ref, bfull_ref, ctx_ref, alpha_ref, *, num_feat):
    TBN, F = feat_ref.shape           # flattened feature block: (TB*N, F)
    N = num_feat
    TB = TBN // N
    A = wf_ref.shape[1]

    feat = feat_ref[...]              # single VMEM load of the feature block
    hid = hid_ref[...]                # (TB, H)

    # att1 = feature_att(features): one big (TB*N, F) @ (F, A) MXU matmul on
    # the wrapper-flattened block (no in-kernel reshape feeding the MXU).
    # bf16 streaming is MXU-native; accumulation is forced to f32.
    att1 = jnp.dot(feat, wf_ref[...],
                   preferred_element_type=jnp.float32) + bf_ref[...]      # (TB*N, A)

    # att2 = hidden_att(hidden): (TB, H) @ (H, A), f32 accumulation.
    att2 = jnp.dot(hid, wh_ref[...],
                   preferred_element_type=jnp.float32) + bh_ref[...]      # (TB, A)

    # sigmoid(att1 + att2.unsqueeze(1)): the (TB*N, A) -> (TB, N, A) regroup
    # is layout-preserving when N is a multiple of the sublane count.
    s = jax.nn.sigmoid(att1.reshape(TB, N, A) + att2[:, None, :])         # (TB, N, A)

    # full_att(...).squeeze(2): degenerate (A -> 1) projection done on the
    # VPU/XLU as broadcast-multiply + lane reduce (no M=1 MXU matmul).
    atten = jnp.sum(s * wfull_ref[...], axis=-1) + bfull_ref[0]           # (TB, N)

    # softmax over the N axis (dim=1 of the original (B, N) tensor),
    # max-subtracted; the per-row divide goes to the EUP approximate
    # reciprocal slot (computed once per row, reused via alpha below).
    m = jnp.max(atten, axis=-1, keepdims=True)
    e = jnp.exp(atten - m)
    inv_denom = pl.reciprocal(jnp.sum(e, axis=-1, keepdims=True), approx=True)
    alpha = e * inv_denom                                                 # (TB, N)

    # context = sum_n alpha_n * features_n — VPU multiply + cross-sublane sum.
    # Elementwise math in f32 (v5e VPU has no bf16); the regroup is
    # layout-preserving when N is a multiple of 8.
    feat3d = feat.astype(jnp.float32).reshape(TB, N, F)
    ctx = jnp.sum(alpha[:, :, None] * feat3d, axis=1)                     # (TB, F)

    ctx_ref[...] = ctx
    alpha_ref[...] = alpha


def _round_up(x, m):
    return (x + m - 1) // m * m


def _vmem_capacity_bytes():
    try:
        return int(pltpu.get_tpu_info().vmem_capacity_bytes)
    except Exception:
        return 64 * 2 ** 20          # conservative fallback (v7x per-TC VMEM)


def _choose_batch_tile(B, N, F, H, A, stream_bytes):
    """Largest batch tile fitting a conservative per-generation VMEM budget,
    capped near B for small batches and split so large batches keep >= 2
    grid steps (megacore sharding on v7x)."""
    row_quant = _SUBLANE * max(1, 4 // stream_bytes)   # 8 for f32, 16 for bf16
    cap = _vmem_capacity_bytes()
    budget = int(cap * 0.6)                            # headroom for compiler temps

    f_lanes = _round_up(F, _LANE)
    n_lanes = _round_up(N, _LANE)
    h_lanes = _round_up(H, _LANE)
    a_lanes = _round_up(A, _LANE)

    # VMEM bytes per batch row: double-buffered ins/outs + f32 temporaries
    # (att1, s, weighted features, ...), all lane-padded.
    per_row = (
        2 * N * f_lanes * stream_bytes
        + 2 * h_lanes * stream_bytes
        + 2 * f_lanes * 4 + 2 * n_lanes * 4
        + 4 * N * max(a_lanes, f_lanes) * 4
    )
    fixed = 2 * (F + H + 2) * a_lanes * 4              # weights / biases (tiny)

    tb = max(row_quant, (budget - fixed) // per_row)
    tb = min(tb, 512)                                  # diminishing returns past ~512 rows
    tb = min(tb, _round_up(B, row_quant))              # don't over-pad small batches
    if tb >= B and B > row_quant:
        tb = _round_up(pl.cdiv(B, 2), row_quant)       # keep >= 2 grid steps (megacore)
    tb = max(row_quant, tb // row_quant * row_quant)
    return int(tb), cap, row_quant


def attention_layer(features, hidden, params, *, tb=None,
                    stream_dtype=jnp.float32):
    """features: (B, N, F), hidden: (B, H) -> (context (B, F), alpha (B, N)).

    stream_dtype: dtype used to stream features / projection weights through
    HBM and the MXU (jnp.bfloat16 on v6e/v7x ~halves the dominant HBM
    stream). Accumulation and sigmoid/softmax/context math stay f32.
    """
    B, N, F = features.shape
    H = hidden.shape[1]
    A = params["wf"].shape[1]

    stream_bytes = jnp.dtype(stream_dtype).itemsize
    auto_tb, vmem_cap, row_quant = _choose_batch_tile(B, N, F, H, A, stream_bytes)
    if tb is None:
        tb = auto_tb
    tb = max(row_quant, _round_up(min(tb, _round_up(B, row_quant)), row_quant))

    # Pad batch to a multiple of the per-step batch tile; padded rows produce
    # finite (uniform) alpha and are sliced off at the end.
    B_pad = _round_up(B, tb)
    if B_pad != B:
        features = jnp.pad(features, ((0, B_pad - B), (0, 0), (0, 0)))
        hidden = jnp.pad(hidden, ((0, B_pad - B), (0, 0)))

    # Flatten features to 2-D in the wrapper (free for a contiguous array):
    # the MXU matmul consumes the block directly and the per-step DMA is one
    # dense contiguous (tb*N, F) slab.
    feat2d = features.reshape(B_pad * N, F).astype(stream_dtype)
    hid = hidden.astype(stream_dtype)
    wf = params["wf"].astype(stream_dtype)
    wh = params["wh"].astype(stream_dtype)
    bf = params["bf"].reshape(1, A).astype(jnp.float32)
    bh = params["bh"].reshape(1, A).astype(jnp.float32)
    wfull = params["wfull"].reshape(1, A).astype(jnp.float32)   # pre-transposed row
    bfull = params["bfull"].reshape(1).astype(jnp.float32)      # scalar -> SMEM

    flops = 2 * B_pad * N * (F * A + A + F) + 2 * B_pad * H * A
    transcendentals = B_pad * N * (A + 1) + B_pad
    bytes_accessed = int(stream_bytes * (B_pad * (N * F + H) + (F + H) * A)
                         + 4 * (B_pad * (F + N) + 3 * A + 1))

    kernel = functools.partial(_attention_kernel, num_feat=N)

    ctx, alpha = pl.pallas_call(
        kernel,
        out_shape=(jax.ShapeDtypeStruct((B_pad, F), jnp.float32),
                   jax.ShapeDtypeStruct((B_pad, N), jnp.float32)),
        grid_spec=pltpu.PrefetchScalarGridSpec(
            num_scalar_prefetch=0,
            grid=(B_pad // tb,),
            in_specs=[
                # Features: one contiguous (tb*N, F) slab per step.
                # (If DMA latency is still exposed on v5e, pipeline_mode=
                #  pl.Buffered(3) on this spec is the next knob.)
                pl.BlockSpec((tb * N, F), lambda b: (b, 0)),
                pl.BlockSpec((tb, H), lambda b: (b, 0)),            # hidden
                pl.BlockSpec((F, A), lambda b: (0, 0)),             # W_feature (in, out)
                pl.BlockSpec((1, A), lambda b: (0, 0)),             # b_feature
                pl.BlockSpec((H, A), lambda b: (0, 0)),             # W_hidden
                pl.BlockSpec((1, A), lambda b: (0, 0)),             # b_hidden
                pl.BlockSpec((1, A), lambda b: (0, 0)),             # W_full (row)
                pl.BlockSpec(memory_space=pltpu.MemorySpace.SMEM),  # b_full scalar
            ],
            out_specs=[
                # Full-row blocks: contiguous HBM writeback; lane-sparse vst
                # cost is negligible vs. the feature DMA (see header note).
                pl.BlockSpec((tb, F), lambda b: (b, 0)),            # context
                pl.BlockSpec((tb, N), lambda b: (b, 0)),            # alpha
            ],
        ),
        compiler_params=pltpu.CompilerParams(
            dimension_semantics=("parallel",),
            vmem_limit_bytes=int(vmem_cap * 0.9)),
        cost_estimate=pl.CostEstimate(
            flops=flops,
            transcendentals=transcendentals,
            bytes_accessed=bytes_accessed),
    )(feat2d, hid, wf, bf, wh, bh, wfull, bfull)

    return ctx[:B], alpha[:B]


def init_params(key, feature_dim, hidden_dim, attention_dim):
    """Deterministic init mirroring nn.Linear's U(-1/sqrt(fan_in), 1/sqrt(fan_in)).

    Weights are stored pre-transposed as (in, out) so the kernel does x @ W."""
    ks = jax.random.split(key, 6)

    def lin(kw, kb, fan_in, fan_out):
        bound = 1.0 / (fan_in ** 0.5)
        w = jax.random.uniform(kw, (fan_in, fan_out), jnp.float32, -bound, bound)
        b = jax.random.uniform(kb, (fan_out,), jnp.float32, -bound, bound)
        return w, b

    wf, bf = lin(ks[0], ks[1], feature_dim, attention_dim)
    wh, bh = lin(ks[2], ks[3], hidden_dim, attention_dim)
    wfull, bfull = lin(ks[4], ks[5], attention_dim, 1)
    return dict(wf=wf, bf=bf, wh=wh, bh=bh, wfull=wfull, bfull=bfull)


def _reference(features, hidden, p):
    att1 = features @ p["wf"] + p["bf"]
    att2 = hidden @ p["wh"] + p["bh"]
    s = jax.nn.sigmoid(att1 + att2[:, None, :])
    atten = (s @ p["wfull"])[..., 0] + p["bfull"][0]
    alpha = jax.nn.softmax(atten, axis=1)
    context = (features * alpha[:, :, None]).sum(axis=1)
    return context, alpha


if __name__ == "__main__":
    B, N = 2, 8                 # batch, number of feature vectors
    feature_dim, hidden_dim, attention_dim = 32, 16, 32

    key = jax.random.PRNGKey(0)
    kf, kh, kp = jax.random.split(key, 3)
    features = jax.random.normal(kf, (B, N, feature_dim), jnp.float32)
    hidden = jax.random.normal(kh, (B, hidden_dim), jnp.float32)
    params = init_params(kp, feature_dim, hidden_dim, attention_dim)

    ctx_ref, alpha_ref = _reference(features, hidden, params)

    # f32 streaming: parity limited only by the approximate EUP reciprocal
    # used for the softmax denominator (rel. err << 5e-3).
    context, alpha = attention_layer(features, hidden, params)
    jax.block_until_ready((context, alpha))
    assert jnp.allclose(context, ctx_ref, atol=5e-3, rtol=5e-3)
    assert jnp.allclose(alpha, alpha_ref, atol=5e-3, rtol=5e-3)

    # bf16 feature/weight streaming (the v6e/v7x bandwidth optimization) with
    # f32 accumulation — validated at a correspondingly looser tolerance.
    ctx_bf16, alpha_bf16 = attention_layer(features, hidden, params,
                                           stream_dtype=jnp.bfloat16)
    jax.block_until_ready((ctx_bf16, alpha_bf16))
    assert jnp.allclose(ctx_bf16, ctx_ref, atol=3e-2, rtol=3e-2)
    assert jnp.allclose(alpha_bf16, alpha_ref, atol=3e-2, rtol=3e-2)

    # Larger batch: exercises the auto-selected batch tile and a multi-step
    # "parallel" grid (>= 2 steps so megacore can shard on v7x).
    B2 = 48
    kf2, kh2 = jax.random.split(jax.random.PRNGKey(1))
    features2 = jax.random.normal(kf2, (B2, N, feature_dim), jnp.float32)
    hidden2 = jax.random.normal(kh2, (B2, hidden_dim), jnp.float32)
    ctx2, alpha2 = attention_layer(features2, hidden2, params)
    jax.block_until_ready((ctx2, alpha2))
    ctx2_ref, alpha2_ref = _reference(features2, hidden2, params)
    assert jnp.allclose(ctx2, ctx2_ref, atol=5e-3, rtol=5e-3)
    assert jnp.allclose(alpha2, alpha2_ref, atol=5e-3, rtol=5e-3)

    print("KERNEL_OK")
</pallas_src>

<mosaic_0001>
module attributes {stable_mosaic.version = 11 : i64} {
  func.func @_attention_kernel(%arg0: i32, %arg1: memref<64x32xf32, #tpu.memory_space<vmem>>, %arg2: memref<8x16xf32, #tpu.memory_space<vmem>>, %arg3: memref<32x32xf32, #tpu.memory_space<vmem>>, %arg4: memref<1x32xf32, #tpu.memory_space<vmem>>, %arg5: memref<16x32xf32, #tpu.memory_space<vmem>>, %arg6: memref<1x32xf32, #tpu.memory_space<vmem>>, %arg7: memref<1x32xf32, #tpu.memory_space<vmem>>, %arg8: memref<1xf32, #tpu.memory_space<smem>>, %arg9: memref<8x32xf32, #tpu.memory_space<vmem>>, %arg10: memref<8x8xf32, #tpu.memory_space<vmem>>) attributes {dimension_semantics = [#tpu.dimension_semantics<parallel>], iteration_bounds = array<i64: 1>, scalar_prefetch = 0 : i64, scratch_operands = 0 : i64, tpu.core_type = #tpu.core_type<tc>, window_params = [{transform_indices = @transform_0, window_bounds = array<i64: 64, 32>}, {transform_indices = @transform_1, window_bounds = array<i64: 8, 16>}, {pipeline_mode = #tpu.pipeline_mode<synchronous>, transform_indices = @transform_2, window_bounds = array<i64: 32, 32>}, {pipeline_mode = #tpu.pipeline_mode<synchronous>, transform_indices = @transform_3, window_bounds = array<i64: 1, 32>}, {pipeline_mode = #tpu.pipeline_mode<synchronous>, transform_indices = @transform_4, window_bounds = array<i64: 16, 32>}, {pipeline_mode = #tpu.pipeline_mode<synchronous>, transform_indices = @transform_5, window_bounds = array<i64: 1, 32>}, {pipeline_mode = #tpu.pipeline_mode<synchronous>, transform_indices = @transform_6, window_bounds = array<i64: 1, 32>}, {transform_indices = @transform_7, window_bounds = array<i64: 1>}, {transform_indices = @transform_8, window_bounds = array<i64: 8, 32>}, {transform_indices = @transform_9, window_bounds = array<i64: 8, 8>}]} {
    %c0 = arith.constant 0 : index
    %c0_0 = arith.constant 0 : index
    %0 = vector.load %arg1[%c0, %c0_0] : memref<64x32xf32, #tpu.memory_space<vmem>>, vector<64x32xf32>
    %c0_1 = arith.constant 0 : index
    %c0_2 = arith.constant 0 : index
    %1 = vector.load %arg2[%c0_1, %c0_2] : memref<8x16xf32, #tpu.memory_space<vmem>>, vector<8x16xf32>
    %c0_3 = arith.constant 0 : index
    %c0_4 = arith.constant 0 : index
    %2 = vector.load %arg3[%c0_3, %c0_4] : memref<32x32xf32, #tpu.memory_space<vmem>>, vector<32x32xf32>
    %cst = arith.constant dense<0.000000e+00> : vector<64x32xf32>
    %3 = tpu.matmul %0, %2, %cst {dimension_numbers = #tpu.dot_dimension_numbers<[1], [0], [0], [1], [0, 0, 1, 1], [], []>} : vector<64x32xf32>, vector<32x32xf32>, vector<64x32xf32> -> vector<64x32xf32>
    %c0_5 = arith.constant 0 : index
    %c0_6 = arith.constant 0 : index
    %4 = vector.load %arg4[%c0_5, %c0_6] : memref<1x32xf32, #tpu.memory_space<vmem>>, vector<1x32xf32>
    %5 = vector.broadcast %4 : vector<1x32xf32> to vector<64x32xf32>
    %6 = arith.addf %3, %5 : vector<64x32xf32>
    %c0_7 = arith.constant 0 : index
    %c0_8 = arith.constant 0 : index
    %7 = vector.load %arg5[%c0_7, %c0_8] : memref<16x32xf32, #tpu.memory_space<vmem>>, vector<16x32xf32>
    %cst_9 = arith.constant dense<0.000000e+00> : vector<8x32xf32>
    %8 = tpu.matmul %1, %7, %cst_9 {dimension_numbers = #tpu.dot_dimension_numbers<[1], [0], [0], [1], [0, 0, 1, 1], [], []>} : vector<8x16xf32>, vector<16x32xf32>, vector<8x32xf32> -> vector<8x32xf32>
    %c0_10 = arith.constant 0 : index
    %c0_11 = arith.constant 0 : index
    %9 = vector.load %arg6[%c0_10, %c0_11] : memref<1x32xf32, #tpu.memory_space<vmem>>, vector<1x32xf32>
    %10 = vector.broadcast %9 : vector<1x32xf32> to vector<8x32xf32>
    %11 = arith.addf %8, %10 : vector<8x32xf32>
    %12 = vector.shape_cast %6 : vector<64x32xf32> to vector<8x8x32xf32>
    %13 = vector.shape_cast %11 : vector<8x32xf32> to vector<8x1x32xf32>
    %14 = vector.broadcast %13 : vector<8x1x32xf32> to vector<8x8x32xf32>
    %15 = arith.addf %12, %14 : vector<8x8x32xf32>
    %16 = arith.negf %15 : vector<8x8x32xf32>
    %17 = math.exp %16 : vector<8x8x32xf32>
    %cst_12 = arith.constant 1.000000e+00 : f32
    %18 = vector.broadcast %cst_12 : f32 to vector<8x8x32xf32>
    %19 = arith.addf %18, %17 : vector<8x8x32xf32>
    %20 = arith.divf %18, %19 : vector<8x8x32xf32>
    %c0_13 = arith.constant 0 : index
    %c0_14 = arith.constant 0 : index
    %21 = vector.load %arg7[%c0_13, %c0_14] : memref<1x32xf32, #tpu.memory_space<vmem>>, vector<1x32xf32>
    %22 = vector.shape_cast %21 : vector<1x32xf32> to vector<1x1x32xf32>
    %23 = vector.broadcast %22 : vector<1x1x32xf32> to vector<8x8x32xf32>
    %24 = arith.mulf %20, %23 : vector<8x8x32xf32>
    %cst_15 = arith.constant dense<0.000000e+00> : vector<8x8xf32>
    %25 = vector.multi_reduction <add>, %24, %cst_15 [2] : vector<8x8x32xf32> to vector<8x8xf32>
    %c0_16 = arith.constant 0 : index
    %26 = memref.load %arg8[%c0_16] : memref<1xf32, #tpu.memory_space<smem>>
    %27 = vector.broadcast %26 : f32 to vector<8x8xf32>
    %28 = arith.addf %25, %27 : vector<8x8xf32>
    %cst_17 = arith.constant dense<0xFF800000> : vector<8xf32>
    %29 = vector.multi_reduction <maximumf>, %28, %cst_17 [1] : vector<8x8xf32> to vector<8xf32>
    %30 = vector.shape_cast %29 : vector<8xf32> to vector<8x1xf32>
    %31 = vector.broadcast %30 : vector<8x1xf32> to vector<8x8xf32>
    %32 = arith.subf %28, %31 : vector<8x8xf32>
    %33 = math.exp %32 : vector<8x8xf32>
    %cst_18 = arith.constant dense<0.000000e+00> : vector<8xf32>
    %34 = vector.multi_reduction <add>, %33, %cst_18 [1] : vector<8x8xf32> to vector<8xf32>
    %35 = vector.shape_cast %34 : vector<8xf32> to vector<8x1xf32>
    %36 = tpu.reciprocal %35 {approx = true} : vector<8x1xf32> -> vector<8x1xf32>
    %37 = vector.broadcast %36 : vector<8x1xf32> to vector<8x8xf32>
    %38 = arith.mulf %33, %37 : vector<8x8xf32>
    %39 = vector.shape_cast %0 : vector<64x32xf32> to vector<8x8x32xf32>
    %40 = vector.shape_cast %38 : vector<8x8xf32> to vector<8x8x1xf32>
    %41 = vector.broadcast %40 : vector<8x8x1xf32> to vector<8x8x32xf32>
    %42 = arith.mulf %41, %39 : vector<8x8x32xf32>
    %cst_19 = arith.constant dense<0.000000e+00> : vector<8x32xf32>
    %43 = vector.multi_reduction <add>, %42, %cst_19 [1] : vector<8x8x32xf32> to vector<8x32xf32>
    %c0_20 = arith.constant 0 : index
    %c0_21 = arith.constant 0 : index
    %44 = vector.load %arg9[%c0_20, %c0_21] : memref<8x32xf32, #tpu.memory_space<vmem>>, vector<8x32xf32>
    tpu.vector_store %arg9[%c0_20, %c0_21], %43 {strides = array<i32>} : memref<8x32xf32, #tpu.memory_space<vmem>>, vector<8x32xf32>,
    %c0_22 = arith.constant 0 : index
    %c0_23 = arith.constant 0 : index
    %45 = vector.load %arg10[%c0_22, %c0_23] : memref<8x8xf32, #tpu.memory_space<vmem>>, vector<8x8xf32>
    tpu.vector_store %arg10[%c0_22, %c0_23], %38 {strides = array<i32>} : memref<8x8xf32, #tpu.memory_space<vmem>>, vector<8x8xf32>,
    return
  }
  func.func @transform_0(%arg0: i32) -> (i32, i32) {
    %c0_i32 = arith.constant 0 : i32
    %c0_i32_0 = arith.constant 0 : i32
    return %arg0, %c0_i32 : i32, i32
  }
  func.func @transform_1(%arg0: i32) -> (i32, i32) {
    %c0_i32 = arith.constant 0 : i32
    %c0_i32_0 = arith.constant 0 : i32
    return %arg0, %c0_i32 : i32, i32
  }
  func.func @transform_2(%arg0: i32) -> (i32, i32) {
    %c0_i32 = arith.constant 0 : i32
    %c0_i32_0 = arith.constant 0 : i32
    %c0_i32_1 = arith.constant 0 : i32
    return %c0_i32, %c0_i32_0 : i32, i32
  }
  func.func @transform_3(%arg0: i32) -> (i32, i32) {
    %c0_i32 = arith.constant 0 : i32
    %c0_i32_0 = arith.constant 0 : i32
    %c0_i32_1 = arith.constant 0 : i32
    return %c0_i32, %c0_i32_0 : i32, i32
  }
  func.func @transform_4(%arg0: i32) -> (i32, i32) {
    %c0_i32 = arith.constant 0 : i32
    %c0_i32_0 = arith.constant 0 : i32
    %c0_i32_1 = arith.constant 0 : i32
    return %c0_i32, %c0_i32_0 : i32, i32
  }
  func.func @transform_5(%arg0: i32) -> (i32, i32) {
    %c0_i32 = arith.constant 0 : i32
    %c0_i32_0 = arith.constant 0 : i32
    %c0_i32_1 = arith.constant 0 : i32
    return %c0_i32, %c0_i32_0 : i32, i32
  }
  func.func @transform_6(%arg0: i32) -> (i32, i32) {
    %c0_i32 = arith.constant 0 : i32
    %c0_i32_0 = arith.constant 0 : i32
    %c0_i32_1 = arith.constant 0 : i32
    return %c0_i32, %c0_i32_0 : i32, i32
  }
  func.func @transform_7(%arg0: i32) -> i32 {
    %c0_i32 = arith.constant 0 : i32
    %c0_i32_0 = arith.constant 0 : i32
    return %c0_i32 : i32
  }
  func.func @transform_8(%arg0: i32) -> (i32, i32) {
    %c0_i32 = arith.constant 0 : i32
    %c0_i32_0 = arith.constant 0 : i32
    return %arg0, %c0_i32 : i32, i32
  }
  func.func @transform_9(%arg0: i32) -> (i32, i32) {
    %c0_i32 = arith.constant 0 : i32
    %c0_i32_0 = arith.constant 0 : i32
    return %arg0, %c0_i32 : i32, i32
  }
}

</mosaic_0001>

<bundles_post_ra>
// kernel: tpu_custom_call.1
= control target key start
LH: loop header
LB: loop body
LE: loop exit
PB: predicated region body
PF: predicated region fallthrough
CT: control target
= control target key end

     0   :  { %16 = vsyncpa [#allocation4], 0  ;;  %vm54_vm0 = vcmask 261120   ;;  %s1362_s0 = inlined_call_operand.vmem [shape: f32[64,32], index: 0, kind: input, shape index: {}]   ;;  %s1363_s1 = inlined_call_operand.vmem [shape: f32[8,16], index: 1, kind: input, shape index: {}]   ;;  %s1364_s2 = inlined_call_operand.vmem [shape: f32[32,32], index: 2, kind: input, shape index: {}]   ;;  %s1365_s3 = inlined_call_operand.vmem [shape: f32[1,32], index: 3, kind: input, shape index: {}]   ;;  %s1366_s4 = inlined_call_operand.vmem [shape: f32[16,32], index: 4, kind: input, shape index: {}]   ;;  %s1367_s5 = inlined_call_operand.vmem [shape: f32[1,32], index: 5, kind: input, shape index: {}]   ;;  %s1368_s6 = inlined_call_operand.vmem [shape: f32[1,32], index: 6, kind: input, shape index: {}]   ;;  %s1369_s7 = inlined_call_operand.<no memory space> [shape: f32[1], index: 7, kind: input, shape index: {}]   ;;  %s1370_s8 = inlined_call_operand.hbm [shape: f32[8,32], index: 8, kind: output, shape index: {0}]   ;;  %s1371_s9 = inlined_call_operand.hbm [shape: f32[8,8], index: 9, kind: output, shape index: {1}]  }
   0x1   :  { %v46_v0 = vld [vmem:[%s1364_s2 + $0x18] sm:$0xff]  ;;  %v45_v1 = vld [vmem:[%s1364_s2 + $0x10] sm:$0xff]  ;;  %v44_v2 = vld [vmem:[%s1364_s2 + $0x8] sm:$0xff] }
   0x2   :  { %965 = vmatprep.subr.mxu1 %v46_v0  ;;  %938 = vmatprep.subr.mxu0 %v46_v0  ;;  %v1143_v3 = vld [vmem:[%s1362_s0 + $0x30] sm:$0xff]  ;;  %v43_v4 = vld [vmem:[%s1364_s2] sm:$0xff] }
   0x3   :  { %969 = vmatpush3.msra.mxu1 %v46_v0  ;;  %939 = vmatpush3.msra.mxu0 %v46_v0 }
   0x4   :  { %966 = vmatprep.subr.mxu1 %v45_v1  ;;  %940 = vmatprep.subr.mxu0 %v45_v1 }
   0x5   :  { %970 = vmatpush3.msra.mxu1 %v45_v1  ;;  %941 = vmatpush3.msra.mxu0 %v45_v1 }
   0x6   :  { %967 = vmatprep.subr.mxu1 %v44_v2  ;;  %942 = vmatprep.subr.mxu0 %v44_v2 }
   0x7   :  { %17 = vsyncpa [#allocation6], 0  ;;  %971 = vmatpush3.msra.mxu1 %v44_v2  ;;  %955 = vmatprep.mubr.msk.f32.mxu1 %vm54_vm0, %v1143_v3  ;;  %v1153_v5 = vld [vmem:[%s1362_s0 + $0x38] sm:$0xff]  ;;  %v185_v6 = vld [vmem:[%s1366_s4 + $0x8] sm:$0xff]  ;;  %v1075_v8 = vmov 0.0   ;;  %vm193_vm1 = vcmask 130048   ;;  %v272_v18 = vlaneseq }
   0x8   :  { %968 = vmatprep.subr.mxu1 %v43_v4  ;;  %943 = vmatpush3.msra.mxu0 %v44_v2  ;;  %v1161_v7 = vld [vmem:[%s1362_s0] sm:$0xff]  ;;  %v1168_v9 = vld [vmem:[%s1362_s0 + $0x8] sm:$0xff]  ;;  %v1176_v11 = vld [vmem:[%s1362_s0 + $0x10] sm:$0xff]  ;;  %vm1076_vm2 = vmmov 0   ;;  %v1077_v16 = vmov 1966171168  }
   0x9   :  { %972 = vmatpush3.msra.mxu1 %v43_v4  ;;  %944 = vmatprep.subr.mxu0 %v43_v4  ;;  %v184_v10 = vld [vmem:[%s1366_s4] sm:$0xff]  ;;  %v1190_v13 = vld [vmem:[%s1362_s0 + $0x18] sm:$0xff]  ;;  %v1204_v15 = vld [vmem:[%s1362_s0 + $0x28] sm:$0xff]  ;;  %v270_v17 = vunpack.c.l.s4 %v1077_v16  ;;  %v1209_v21 = vshrl.u32 %v272_v18, 7  ;;  %vm504_vm3 = vcmask 1041409   ;;  %vm506_vm4 = vcmask 1042434  }
   0xa   :  { %956 = vmatmul.mubr.msk.f32.vlgmr.msra.gmra.mxu1 %vm54_vm0, %v1153_v5  ;;  %958 = vmatprep.subr.mxu1 %v1075_v8  ;;  %v42_v12 = vld [vmem:[%s1363_s1] sm:$0xff]  ;;  %vm508_vm5 = vcmask 1043459   ;;  %vm510_vm6 = vcmask 1044484   ;;  %vm512_vm7 = vcmask 1045509   ;;  %vm514_vm8 = vcmask 1046534  }
   0xb   :  { %959 = vmatpush3.msra.mxu1 %v185_v6  ;;  %945 = vmatpush3.msra.mxu0 %v43_v4  ;;  %v1195_v14 = vld [vmem:[%s1362_s0 + $0x20] sm:$0xff]  ;;  %v271_v20 = vunpack.c.0.s8 %v270_v17  ;;  %v1216_v33 = vsub.s32 0, %v1209_v21  ;;  %vm516_vm9 = vcmask 1047559   ;;  %vm519_vm10 = vcmask 64512  }
   0xc   :  { %946 = vmatprep.mubr.msk.f32.mxu0 %vm54_vm0, %v1161_v7  ;;  %960 = vmatprep.subr.mxu1 %v1075_v8  ;;  %v912_v24 = vld [vmem:[%s1367_s5] ss:$0 sm:$0xff] }
   0xd   :  { %947 = vmatmul.mubr.msk.f32.vlgmr.msra.gmra.mxu0 %vm54_vm0, %v1168_v9  ;;  %961 = vmatpush3.msra.mxu1 %v184_v10  ;;  %v274_v25 = vsub.s32 %v271_v20, %v1209_v21  ;;  %v903_v35 = vld [vmem:[%s1365_s3] ss:$0 sm:$0xff] }
   0xe   :  { %962 = vmatprep.mubr.msk.f32.mxu1 %vm1076_vm2, %v1075_v8  ;;  %949 = vmatprep.mubr.msk.f32.mxu0 %vm54_vm0, %v1176_v11 }
   0xf   :  { %963 = vmatmul.mubr.msk.f32.vlgmr.msra.gmra.mxu1 %vm193_vm1, %v42_v12 }
  0x11   :  { %950 = vmatmul.mubr.msk.f32.gmra.mxu0 %vm54_vm0, %v1190_v13 }
  0x12   :  { %952 = vmatprep.mubr.msk.f32.mxu0 %vm54_vm0, %v1195_v14 }
  0x15   :  { %953 = vmatmul.mubr.msk.f32.gmra.mxu0 %vm54_vm0, %v1204_v15 }
  0xca   :  { %v957_v19 = vpop.f32.mrf.mxu1 }
  0xcb   :  { %v181_v12 = vadd.f32 %v957_v19, %v903_v35 }
  0xcc   :  { %v175_v22 = vpop.f32.mrf.mxu1 }
  0xcd   :  { %v948_v23 = vpop.f32.mrf.mxu0  ;;  %v176_v39 = vadd.f32 %v903_v35, %v175_v22 }
  0xce   :  { %v151_v40 = vadd.f32 %v948_v23, %v903_v35 }
  0xcf   :  { %v263_v26 = vpop.f32.mrf.mxu1  ;;  %v145_v27 = vpop.f32.mrf.mxu0 }
  0xd0   :  { %v264_v28 = vadd.f32 %v912_v24, %v263_v26  ;;  %v146_v41 = vadd.f32 %v903_v35, %v145_v27 }
  0xd1   :  { %v964_v29 = vpop.f32.mrf.mxu1  ;;  %v951_v30 = vpop.f32.mrf.mxu0 }
  0xd2   :  { %v268_v31 = vcombine.high %v264_v28, %v264_v28  ;;  %v275_v32 = vrot.slane %v264_v28, %v274_v25  ;;  %v161_v47 = vadd.f32 %v951_v30, %v903_v35 }
  0xd3   :  { %v155_v34 = vpop.f32.mrf.mxu0 }
  0xd4   :  { %v282_v36 = vrot.slane %v268_v31, %v274_v25  ;;  %v283_v37 = vcombine.high %v275_v32, %v275_v32  ;;  %v291_v38 = vrot.slane %v275_v32, %v274_v25  ;;  %v156_v48 = vadd.f32 %v903_v35, %v155_v34 }
  0xd5   :  { %v954_v42 = vpop.f32.mrf.mxu0 }
  0xd6   :  { %v284_v43 = vcombine.high %v282_v36, %v282_v36  ;;  %v305_v44 = vrot.slane %v283_v37, %v274_v25  ;;  %v320_v45 = vrot.slane %v291_v38, %v1216_v33  ;;  %v313_v46 = vcombine.high %v291_v38, %v291_v38 }
  0xd7   :  { %v171_v49 = vadd.f32 %v954_v42, %v903_v35  ;;  %v165_v50 = vpop.f32.mrf.mxu0  ;;  %v298_v51 = vrot.slane %v282_v36, %v274_v25 }
  0xd8   :  { %v324_v52 = vrot.slane %v305_v44, %v1216_v33  ;;  %v357_v53 = vadd.f32 %v320_v45, %v146_v41  ;;  %v315_v54 = vcombine.high %v305_v44, %v305_v44  ;;  %v328_v55 = vrot.slane %v313_v46, %v1216_v33  ;;  %v922_v44 = vld [vmem:[%s1368_s6] ss:$0 sm:$0xff] }
  0xd9   :  { %v312_v56 = vrot.slane %v284_v43, %v274_v25  ;;  %v166_v57 = vadd.f32 %v903_v35, %v165_v50  ;;  %v314_v58 = vcombine.high %v298_v51, %v298_v51  ;;  %v336_v59 = vrot.slane %v298_v51, %v1216_v33 }
  0xda   :  { %v358_v60 = vadd.f32 %v324_v52, %v151_v40  ;;  %v914_v61 = vmul.f32 -1.442695, %v357_v53  ;;  %v332_v62 = vrot.slane %v315_v54, %v1216_v33  ;;  %v359_v63 = vadd.f32 %v328_v55, %v156_v48 }
  0xdb   :  { %v316_v0 = vcombine.high %v312_v56, %v312_v56  ;;  %v340_v1 = vrot.slane %v312_v56, %v1216_v33  ;;  %v344_v2 = vrot.slane %v314_v58, %v1216_v33  ;;  %v361_v4 = vadd.f32 %v336_v59, %v166_v57 }
  0xdc   :  { %v915_v6 = vmul.f32 -1.442695, %v358_v60  ;;  %981 = vpow2.f32 %v914_v61  ;;  %v360_v8 = vadd.f32 %v332_v62, %v161_v47  ;;  %v916_v10 = vmul.f32 -1.442695, %v359_v63 }
  0xdd   :  { %v348_v16 = vrot.slane %v316_v0, %v1216_v33  ;;  %v362_v17 = vadd.f32 %v340_v1, %v171_v49  ;;  %v363_v20 = vadd.f32 %v344_v2, %v176_v39  ;;  %v918_v23 = vmul.f32 -1.442695, %v361_v4 }
  0xde   :  { %983 = vpow2.f32 %v915_v6  ;;  %v917_v22 = vmul.f32 -1.442695, %v360_v8  ;;  %v471_v8 = vand.u32 127, %v272_v18 }
  0xdf   :  { %985 = vpow2.f32 %v916_v10  ;;  %v364_v24 = vadd.f32 %v348_v16, %v181_v12  ;;  %v919_v25 = vmul.f32 -1.442695, %v362_v17  ;;  %v920_v26 = vmul.f32 -1.442695, %v363_v20 }
  0xe0   :  { %987 = vpow2.f32 %v917_v22  ;;  %v453_v10 = vstv %s1369_s7  ;;  %v1245_v16 = vsub.s32 %v471_v8, %v1209_v21  ;;  %v550_v8 = vsub.s32 6, %v1209_v21  ;;  %s1079_s7 = smov [#allocation5]  }
  0xe1   :  { %989 = vpow2.f32 %v919_v25  ;;  %v921_v27 = vmul.f32 -1.442695, %v364_v24  ;;  %s891_s19 = sshll.u32 %s1079_s7, 4  ;;  %s892_s19 = int_to_ptr.vmem [resolvable:$true] %s891_s19 }
  0xe2   :  { %991 = vpow2.f32 %v918_v23  ;;  %s1031_s20 = scalar_lea.vmem %s892_s19, 128  ;;  %p1036_p1 = scmp.lt.s32.totalorder %s892_s19, %s892_s19 }
  0xe3   :  { %993 = vpow2.f32 %v921_v27  ;;  %p1032_p0 = scmp.ne.s32.totalorder %s892_s19, %s1031_s20  ;;  %p1037_p2 = scmp.lt.s32.totalorder %s1031_s20, %s1031_s20 }
  0xe4   :  { %995 = vpow2.f32 %v920_v26 }
  0xe5   :  { %p1038_p3 = por %p1037_p2, %p1036_p1 }
  0xe7   :  { %p1039_p4 = pnand %p1038_p3, %p1032_p0 }
  0xe9   :  { %v982_v28 = vpop.eup %981 }
  0xea   :  { %v389_v29 = vadd.f32 1.0, %v982_v28 }
  0xeb   :  { %v984_v19 = vpop.eup %983 }
  0xec   :  { %v986_v30 = vpop.eup %985  ;;  %v390_v31 = vadd.f32 1.0, %v984_v19  ;;  %997 = vrcp.f32 %v389_v29 }
  0xed   :  { %v988_v32 = vpop.eup %987  ;;  %v391_v34 = vadd.f32 1.0, %v986_v30 }
  0xee   :  { %v990_v35 = vpop.eup %989  ;;  %999 = vrcp.f32 %v390_v31  ;;  %v392_v36 = vadd.f32 1.0, %v988_v32 }
  0xef   :  { %v992_v37 = vpop.eup %991  ;;  %1001 = vrcp.f32 %v391_v34  ;;  %v394_v38 = vadd.f32 1.0, %v990_v35 }
  0xf0   :  { %v994_v39 = vpop.eup %993  ;;  %1003 = vrcp.f32 %v392_v36  ;;  %v393_v40 = vadd.f32 1.0, %v992_v37 }
  0xf1   :  { %v996_v41 = vpop.eup %995  ;;  %v396_v43 = vadd.f32 1.0, %v994_v39 }
  0xf2   :  { %1005 = vrcp.f32 %v393_v40  ;;  %v395_v42 = vadd.f32 1.0, %v996_v41 }
  0xf3   :  { %1007 = vrcp.f32 %v394_v38 }
  0xf4   :  { %1009 = vrcp.f32 %v395_v42 }
  0xf5   :  { %1011 = vrcp.f32 %v396_v43 }
  0xf9   :  { %v998_v45 = vpop.eup %997 }
  0xfa   :  { %v420_v46 = vmul.f32 %v998_v45, %v922_v44 }
  0xfb   :  { %v1000_v47 = vpop.eup %999 }
  0xfc   :  { %v1002_v48 = vpop.eup %1001  ;;  %v428_v49 = vsel %vm54_vm0, %v420_v46, 0.0  ;;  %v421_v50 = vmul.f32 %v1000_v47, %v922_v44 }
  0xfd   :  { %v1004_v51 = vpop.eup %1003  ;;  %429 = vadd.xlane.f32.xlu0 %v428_v49  ;;  %v422_v52 = vmul.f32 %v1002_v48, %v922_v44 }
  0xfe   :  { %v423_v55 = vmul.f32 %v1004_v51, %v922_v44  ;;  %v431_v57 = vsel %vm54_vm0, %v421_v50, 0.0  ;;  %v1078_v50 = vmov 0   ;;  %v530_v51 = vsub.s32 1, %v1209_v21 }
  0xff   :  { %v1006_v53 = vpop.eup %1005  ;;  %v434_v54 = vsel %vm54_vm0, %v422_v52, 0.0  ;;  %980 = vset.pattern.permute.xlu0 %v1078_v50  ;;  %979 = vset.pattern.permute.xlu1 %v1078_v50  ;;  %v534_v52 = vsub.s32 2, %v1209_v21 }
 0x100   :  { %v1008_v56 = vpop.eup %1007  ;;  %435 = vadd.xlane.f32.xlu1 %v434_v54  ;;  %v424_v58 = vmul.f32 %v1006_v53, %v922_v44  ;;  %v437_v60 = vsel %vm54_vm0, %v423_v55, 0.0  ;;  %v538_v53 = vsub.s32 3, %v1209_v21 }
 0x101   :  { %v1010_v59 = vpop.eup %1009  ;;  %432 = vadd.xlane.f32.xlu0 %v431_v57  ;;  %v425_v61 = vmul.f32 %v1008_v56, %v922_v44 }
 0x102   :  { %v1012_v62 = vpop.eup %1011  ;;  %v440_v63 = vsel %vm54_vm0, %v424_v58, 0.0  ;;  %v426_v0 = vmul.f32 %v1010_v59, %v922_v44  ;;  %v542_v58 = vsub.s32 4, %v1209_v21 }
 0x103   :  { %v443_v1 = vsel %vm54_vm0, %v425_v61, 0.0  ;;  %v427_v2 = vmul.f32 %v1012_v62, %v922_v44 }
 0x104   :  { %438 = vadd.xlane.f32.xlu1 %v437_v60  ;;  %v446_v4 = vsel %vm54_vm0, %v426_v0, 0.0 }
 0x105   :  { %441 = vadd.xlane.f32.xlu0 %v440_v63  ;;  %v449_v6 = vsel %vm54_vm0, %v427_v2, 0.0 }
 0x108   :  { %444 = vadd.xlane.f32.xlu1 %v443_v1  ;;  %v546_v1 = vsub.s32 5, %v1209_v21 }
 0x109   :  { %447 = vadd.xlane.f32.xlu0 %v446_v4 }
 0x10c   :  { %450 = vadd.xlane.f32.xlu1 %v449_v6 }
 0x186   :  { %v430_v12 = vpop.xlane.xlu0 %429 }
 0x187   :  { %v454_v17 = vadd.f32 %v453_v10, %v430_v12 }
 0x189   :  { %v436_v20 = vpop.xlane.xlu1 %435  ;;  %v475_v25 = vrot.slane %v454_v17, %v1245_v16 }
 0x18a   :  { %v456_v22 = vadd.f32 %v453_v10, %v436_v20  ;;  %v433_v23 = vpop.xlane.xlu0 %432  ;;  %v554_v20 = vsub.s32 7, %v1209_v21 }
 0x18b   :  { %v455_v24 = vadd.f32 %v453_v10, %v433_v23 }
 0x18c   :  { %v483_v27 = vrot.slane %v456_v22, %v1245_v16 }
 0x18d   :  { %v479_v26 = vrot.slane %v455_v24, %v1245_v16  ;;  %v439_v18 = vpop.xlane.xlu1 %438 }
 0x18e   :  { %v457_v28 = vadd.f32 %v453_v10, %v439_v18  ;;  %v442_v29 = vpop.xlane.xlu0 %441 }
 0x18f   :  { %v505_v19 = vsel %vm504_vm3, %v479_v26, %v475_v25  ;;  %v458_v30 = vadd.f32 %v453_v10, %v442_v29 }
 0x190   :  { %v487_v31 = vrot.slane %v457_v28, %v1245_v16  ;;  %v507_v32 = vsel %vm506_vm4, %v483_v27, %v505_v19 }
 0x191   :  { %v491_v34 = vrot.slane %v458_v30, %v1245_v16  ;;  %v445_v35 = vpop.xlane.xlu1 %444 }
 0x192   :  { %v509_v36 = vsel %vm508_vm5, %v487_v31, %v507_v32  ;;  %v459_v37 = vadd.f32 %v453_v10, %v445_v35  ;;  %v448_v38 = vpop.xlane.xlu0 %447 }
 0x193   :  { %v511_v39 = vsel %vm510_vm6, %v491_v34, %v509_v36  ;;  %v460_v40 = vadd.f32 %v453_v10, %v448_v38 }
 0x194   :  { %v495_v41 = vrot.slane %v459_v37, %v1245_v16 }
 0x195   :  { %v499_v42 = vrot.slane %v460_v40, %v1245_v16  ;;  %v451_v43 = vpop.xlane.xlu1 %450 }
 0x196   :  { %v461_v44 = vadd.f32 %v453_v10, %v451_v43  ;;  %v513_v45 = vsel %vm512_vm7, %v495_v41, %v511_v39 }
 0x197   :  { %v515_v46 = vsel %vm514_vm8, %v499_v42, %v513_v45 }
 0x198   :  { %v503_v47 = vrot.slane %v461_v44, %v1245_v16 }
 0x19a   :  { %v517_v48 = vsel %vm516_vm9, %v503_v47, %v515_v46 }
 0x19b   :  { %v520_v49 = vsel %vm519_vm10, %v517_v48, -inf }
 0x19c   :  { %521 = vmax.xlane.f32.xlu0 %v520_v49 }
 0x225   :  { %v522_v54 = vpop.xlane.xlu0 %521 }
 0x226   :  { %v527_v55 = vrot.slane %v522_v54, %v1216_v33  ;;  %v531_v56 = vrot.slane %v522_v54, %v530_v51  ;;  %v535_v57 = vrot.slane %v522_v54, %v534_v52  ;;  %v539_v59 = vrot.slane %v522_v54, %v538_v53 }
 0x227   :  { %v543_v2 = vrot.slane %v522_v54, %v542_v58  ;;  %v547_v10 = vrot.slane %v522_v54, %v546_v1  ;;  %v555_v25 = vrot.slane %v522_v54, %v554_v20 }
 0x228   :  { %v564_v60 = vsub.f32 %v454_v17, %v527_v55  ;;  %v565_v61 = vsub.f32 %v455_v24, %v531_v56  ;;  %v566_v62 = vsub.f32 %v456_v22, %v535_v57  ;;  %v567_v4 = vsub.f32 %v457_v28, %v539_v59 }
 0x229   :  { %v568_v12 = vsub.f32 %v458_v30, %v543_v2  ;;  %v551_v22 = vrot.slane %v522_v54, %v550_v8  ;;  %v569_v23 = vsub.f32 %v459_v37, %v547_v10  ;;  %v571_v29 = vsub.f32 %v461_v44, %v555_v25 }
 0x22a   :  { %v572_v63 = vmul.f32 1.442695, %v564_v60  ;;  %v574_v0 = vmul.f32 1.442695, %v565_v61  ;;  %v576_v6 = vmul.f32 1.442695, %v566_v62 }
 0x22b   :  { %v578_v17 = vmul.f32 1.442695, %v567_v4  ;;  %v580_v24 = vmul.f32 1.442695, %v568_v12  ;;  %v570_v26 = vsub.f32 %v460_v40, %v551_v22  ;;  %v582_v18 = vmul.f32 1.442695, %v569_v23 }
 0x22c   :  { %1013 = vpow2.f32 %v572_v63  ;;  %v586_v31 = vmul.f32 1.442695, %v571_v29 }
 0x22d   :  { %1015 = vpow2.f32 %v574_v0  ;;  %v584_v19 = vmul.f32 1.442695, %v570_v26 }
 0x22e   :  { %1017 = vpow2.f32 %v576_v6 }
 0x22f   :  { %1019 = vpow2.f32 %v578_v17 }
 0x230   :  { %1021 = vpow2.f32 %v580_v24 }
 0x231   :  { %1023 = vpow2.f32 %v582_v18 }
 0x232   :  { %1025 = vpow2.f32 %v584_v19 }
 0x233   :  { %1027 = vpow2.f32 %v586_v31 }
 0x239   :  { %v1014_v27 = vpop.eup %1013 }
 0x23a   :  { %v1016_v28 = vpop.eup %1015  ;;  %597 = vperm.xlu1 %979, %v1014_v27  }
 0x23b   :  { %600 = vperm.xlu0 %980, %v1016_v28   ;;  %v1018_v30 = vpop.eup %1017 }
 0x23c   :  { %v1020_v32 = vpop.eup %1019 }
 0x23d   :  { %v1022_v34 = vpop.eup %1021 }
 0x23e   :  { %603 = vperm.xlu1 %979, %v1018_v30   ;;  %v1024_v35 = vpop.eup %1023 }
 0x23f   :  { %v1026_v36 = vpop.eup %1025 }
 0x240   :  { %v1028_v37 = vpop.eup %1027 }
 0x242   :  { %606 = vperm.xlu1 %979, %v1020_v32  }
 0x246   :  { %609 = vperm.xlu1 %979, %v1022_v34  }
 0x24a   :  { %612 = vperm.xlu1 %979, %v1024_v35  }
 0x24e   :  { %615 = vperm.xlu1 %979, %v1026_v36  }
 0x252   :  { %618 = vperm.xlu1 %979, %v1028_v37  }
 0x2b5   :  { %v598_v38 = vpop.permute.xlu1 %597 }
 0x2b6   :  { %v601_v42 = vpop.permute.xlu0 %600  ;;  %v623_v45 = vrot.slane %v598_v38, %v1245_v16 }
 0x2b7   :  { %v627_v44 = vrot.slane %v601_v42, %v1245_v16 }
 0x2b9   :  { %v604_v39 = vpop.permute.xlu1 %603  ;;  %v652_v50 = vsel %vm504_vm3, %v627_v44, %v623_v45 }
 0x2ba   :  { %v631_v46 = vrot.slane %v604_v39, %v1245_v16 }
 0x2bc   :  { %v653_v55 = vsel %vm506_vm4, %v631_v46, %v652_v50 }
 0x2bd   :  { %v607_v40 = vpop.permute.xlu1 %606 }
 0x2be   :  { %v635_v47 = vrot.slane %v607_v40, %v1245_v16 }
 0x2c0   :  { %v654_v57 = vsel %vm508_vm5, %v635_v47, %v653_v55 }
 0x2c1   :  { %v610_v41 = vpop.permute.xlu1 %609 }
 0x2c2   :  { %v639_v48 = vrot.slane %v610_v41, %v1245_v16 }
 0x2c4   :  { %v655_v59 = vsel %vm510_vm6, %v639_v48, %v654_v57 }
 0x2c5   :  { %v613_v43 = vpop.permute.xlu1 %612 }
 0x2c6   :  { %v643_v54 = vrot.slane %v613_v43, %v1245_v16 }
 0x2c8   :  { %v656_v61 = vsel %vm512_vm7, %v643_v54, %v655_v59 }
 0x2c9   :  { %v616_v49 = vpop.permute.xlu1 %615 }
 0x2ca   :  { %v647_v56 = vrot.slane %v616_v49, %v1245_v16 }
 0x2cc   :  { %v657_v63 = vsel %vm514_vm8, %v647_v56, %v656_v61 }
 0x2cd   :  { %v619_v60 = vpop.permute.xlu1 %618 }
 0x2ce   :  { %v651_v62 = vrot.slane %v619_v60, %v1245_v16 }
 0x2d0   :  { %v658_v0 = vsel %vm516_vm9, %v651_v62, %v657_v63 }
 0x2d1   :  { %v660_v2 = vsel %vm519_vm10, %v658_v0, 0.0 }
 0x2d2   :  { %661 = vadd.xlane.f32.xlu1 %v660_v2 }
 0x35b   :  { %v662_v4 = vpop.xlane.xlu1 %661 }
 0x35c   :  { %1029 = vrcp.f32 %v662_v4 }
 0x369   :  { %v1030_v6 = vpop.eup %1029 }
 0x36a   :  { %v668_v10 = vrot.slane %v1030_v6, %v1216_v33  ;;  %v672_v17 = vrot.slane %v1030_v6, %v530_v51  ;;  %v676_v23 = vrot.slane %v1030_v6, %v534_v52  ;;  %v680_v25 = vrot.slane %v1030_v6, %v538_v53 }
 0x36b   :  { %v684_v18 = vrot.slane %v1030_v6, %v542_v58  ;;  %v688_v51 = vrot.slane %v1030_v6, %v546_v1  ;;  %v692_v52 = vrot.slane %v1030_v6, %v550_v8  ;;  %v696_v53 = vrot.slane %v1030_v6, %v554_v20 }
 0x36c   :  { %v705_v12 = vmul.f32 %v1014_v27, %v668_v10  ;;  %v706_v22 = vmul.f32 %v1016_v28, %v672_v17  ;;  %v707_v24 = vmul.f32 %v1018_v30, %v676_v23  ;;  %v708_v26 = vmul.f32 %v1020_v32, %v680_v25 }
 0x36d   :  { %v709_v33 = vmul.f32 %v1022_v34, %v684_v18  ;;  %v710_v27 = vmul.f32 %v1024_v35, %v688_v51  ;;  %v711_v28 = vmul.f32 %v1026_v36, %v692_v52  ;;  %v712_v29 = vmul.f32 %v1028_v37, %v696_v53 }
 0x36e   :  { %715 = vperm.xlu0 %980, %v705_v12  }
 0x372   :  { %720 = vperm.xlu0 %980, %v706_v22  }
 0x376   :  { %725 = vperm.xlu0 %980, %v707_v24  }
 0x37a   :  { %730 = vperm.xlu0 %980, %v708_v26  }
 0x37e   :  { %735 = vperm.xlu0 %980, %v709_v33  }
 0x382   :  { %740 = vperm.xlu0 %980, %v710_v27  }
 0x386   :  { %745 = vperm.xlu0 %980, %v711_v28  }
 0x38a   :  { %750 = vperm.xlu0 %980, %v712_v29  }
 0x3e9   :  { %v716_v19 = vpop.permute.xlu0 %715 }
 0x3ea   :  { %v753_v31 = vmul.f32 %v716_v19, %v1161_v7  ;;  %v837_v48 = vrot.slane %v716_v19, %v1245_v16 }
 0x3ec   :  { %v761_v8 = vsel %vm54_vm0, %v753_v31, 0.0 }
 0x3ed   :  { %v721_v58 = vpop.permute.xlu0 %720  ;;  %v762_v37 = vrot.slane %v761_v8, 4 }
 0x3ee   :  { %v754_v30 = vmul.f32 %v721_v58, %v1168_v9  ;;  %v841_v47 = vrot.slane %v721_v58, %v1245_v16 }
 0x3f0   :  { %v768_v34 = vsel %vm54_vm0, %v754_v30, 0.0  ;;  %v866_v63 = vsel %vm504_vm3, %v841_v47, %v837_v48 }
 0x3f1   :  { %v726_v1 = vpop.permute.xlu0 %725  ;;  %v769_v36 = vrot.slane %v768_v34, 4 }
 0x3f2   :  { %v755_v32 = vmul.f32 %v726_v1, %v1176_v11  ;;  %v763_v11 = vadd.f32 %v762_v37, %v761_v8  ;;  %v845_v50 = vrot.slane %v726_v1, %v1245_v16 }
 0x3f3   :  { %v770_v41 = vadd.f32 %v769_v36, %v768_v34 }
 0x3f4   :  { %v775_v35 = vsel %vm54_vm0, %v755_v32, 0.0  ;;  %v764_v55 = vrot.slane %v763_v11, 2  ;;  %v867_v6 = vsel %vm506_vm4, %v845_v50, %v866_v63 }
 0x3f5   :  { %v731_v21 = vpop.permute.xlu0 %730  ;;  %v776_v38 = vrot.slane %v775_v35, 4  ;;  %v771_v49 = vrot.slane %v770_v41, 2 }
 0x3f6   :  { %v756_v20 = vmul.f32 %v731_v21, %v1190_v13  ;;  %v849_v56 = vrot.slane %v731_v21, %v1245_v16  ;;  %v765_v17 = vadd.f32 %v764_v55, %v763_v11 }
 0x3f7   :  { %v777_v42 = vadd.f32 %v776_v38, %v775_v35  ;;  %v772_v4 = vadd.f32 %v771_v49, %v770_v41 }
 0x3f8   :  { %v782_v39 = vsel %vm54_vm0, %v756_v20, 0.0  ;;  %v868_v23 = vsel %vm508_vm5, %v849_v56, %v867_v6  ;;  %v766_v32 = vrot.slane %v765_v17, 1 }
 0x3f9   :  { %v783_v9 = vrot.slane %v782_v39, 4  ;;  %v736_v40 = vpop.permute.xlu0 %735  ;;  %v773_v53 = vrot.slane %v772_v4, 1 }
 0x3fa   :  { %v757_v7 = vmul.f32 %v736_v40, %v1195_v14  ;;  %v778_v14 = vrot.slane %v777_v42, 2  ;;  %v853_v60 = vrot.slane %v736_v40, %v1245_v16 }
 0x3fb   :  { %v784_v44 = vadd.f32 %v783_v9, %v782_v39 }
 0x3fc   :  { %v789_v43 = vsel %vm54_vm0, %v757_v7, 0.0  ;;  %v779_v22 = vadd.f32 %v778_v14, %v777_v42  ;;  %v869_v26 = vsel %vm510_vm6, %v853_v60, %v868_v23 }
 0x3fd   :  { %v790_v45 = vrot.slane %v789_v43, 4  ;;  %v741_v46 = vpop.permute.xlu0 %740  ;;  %v785_v59 = vrot.slane %v784_v44, 2 }
 0x3fe   :  { %v758_v13 = vmul.f32 %v741_v46, %v1204_v15  ;;  %v857_v0 = vrot.slane %v741_v46, %v1245_v16  ;;  %v780_v30 = vrot.slane %v779_v22, 1 }
 0x3ff   :  { %v791_v54 = vadd.f32 %v790_v45, %v789_v43  ;;  %v786_v25 = vadd.f32 %v785_v59, %v784_v44 }
 0x400   :  { %v796_v57 = vsel %vm54_vm0, %v758_v13, 0.0  ;;  %v870_v27 = vsel %vm512_vm7, %v857_v0, %v869_v26 }
 0x401   :  { %v797_v61 = vrot.slane %v796_v57, 4  ;;  %v746_v62 = vpop.permute.xlu0 %745  ;;  %v792_v15 = vrot.slane %v791_v54, 2  ;;  %v787_v34 = vrot.slane %v786_v25, 1 }
 0x402   :  { %v759_v2 = vmul.f32 %v746_v62, %v1143_v3  ;;  %v861_v12 = vrot.slane %v746_v62, %v1245_v16 }
 0x403   :  { %v798_v10 = vadd.f32 %v797_v61, %v796_v57  ;;  %v793_v51 = vadd.f32 %v792_v15, %v791_v54 }
 0x404   :  { %v803_v24 = vsel %vm54_vm0, %v759_v2, 0.0  ;;  %v871_v58 = vsel %vm514_vm8, %v861_v12, %v870_v27 }
 0x405   :  { %v799_v18 = vrot.slane %v798_v10, 2  ;;  %v804_v33 = vrot.slane %v803_v24, 4  ;;  %v751_v3 = vpop.permute.xlu0 %750 }
 0x406   :  { %v760_v52 = vmul.f32 %v751_v3, %v1153_v5  ;;  %v865_v28 = vrot.slane %v751_v3, %v1245_v16  ;;  %v794_v5 = vrot.slane %v793_v51, 1 }
 0x407   :  { %v800_v29 = vadd.f32 %v799_v18, %v798_v10  ;;  %v805_v19 = vadd.f32 %v804_v33, %v803_v24 }
 0x408   :  { %v810_v31 = vsel %vm54_vm0, %v760_v52, 0.0  ;;  %v872_v1 = vsel %vm516_vm9, %v865_v28, %v871_v58 }
 0x409   :  { %v806_v8 = vrot.slane %v805_v19, 2  ;;  %v811_v35 = vrot.slane %v810_v31, 4  ;;  %874 = vst.msk [vmem:[#allocation5] sm:$0xff] %vm519_vm10, %v872_v1 }
 0x40a   :  { %1042 = shalt.err (!%p1039_p4)
}
 0x40b   :  { %894 = dma.vmem_to_hbm [thread:$0]  %s892_s19, 128, %s1371_s9, [#allocation6]   ;;  %v774_v16 = vadd.f32 %v773_v53, %v772_v4  ;;  %v801_v21 = vrot.slane %v800_v29, 1  ;;  %v807_v20 = vadd.f32 %v806_v8, %v805_v19  ;;  %v812_v36 = vadd.f32 %v811_v35, %v810_v31 }
 0x40c   :  { %v781_v37 = vadd.f32 %v780_v30, %v779_v22  ;;  %v767_v38 = vadd.f32 %v766_v32, %v765_v17  ;;  %v788_v39 = vadd.f32 %v787_v34, %v786_v25  ;;  %v795_v7 = vadd.f32 %v794_v5, %v793_v51  ;;  %s1080_s9 = smov [#allocation3]  }
 0x40d   :  { %v808_v9 = vrot.slane %v807_v20, 1  ;;  %v813_v40 = vrot.slane %v812_v36, 2  ;;  %v802_v11 = vadd.f32 %v801_v21, %v800_v29  ;;  %s881_s2 = sshll.u32 %s1080_s9, 4  ;;  %s882_s2 = int_to_ptr.vmem [resolvable:$true] %s881_s2 }
 0x40e   :  { %v825_v41 = vsel %vm504_vm3, %v774_v16, %v767_v38  ;;  %s1051_s23 = scalar_lea.vmem %s882_s2, 128  ;;  %p1056_p6 = scmp.lt.s32.totalorder %s882_s2, %s882_s2 }
 0x40f   :  { %v814_v42 = vadd.f32 %v813_v40, %v812_v36  ;;  %v809_v43 = vadd.f32 %v808_v9, %v807_v20  ;;  %v826_v44 = vsel %vm506_vm4, %v781_v37, %v825_v41  ;;  %p1052_p5 = scmp.ne.s32.totalorder %s882_s2, %s1051_s23  ;;  %p1057_p7 = scmp.lt.s32.totalorder %s1051_s23, %s1051_s23 }
 0x410   :  { %v827_v46 = vsel %vm508_vm5, %v788_v39, %v826_v44 }
 0x411   :  { %v815_v45 = vrot.slane %v814_v42, 1  ;;  %v828_v47 = vsel %vm510_vm6, %v795_v7, %v827_v46  ;;  %p1058_p8 = por %p1057_p7, %p1056_p6 }
 0x412   :  { %v829_v48 = vsel %vm512_vm7, %v802_v11, %v828_v47 }
 0x413   :  { %v816_v13 = vadd.f32 %v815_v45, %v814_v42  ;;  %v830_v49 = vsel %vm514_vm8, %v809_v43, %v829_v48  ;;  %p1059_p9 = pnand %p1058_p8, %p1052_p5 }
 0x415   :  { %v831_v50 = vsel %vm516_vm9, %v816_v13, %v830_v49 }
 0x416   :  { %833 = vst.msk [vmem:[#allocation3] sm:$0xff] %vm54_vm0, %v831_v50 }
 0x417   :  { %1062 = shalt.err (!%p1059_p9)
}
 0x418   :  { %884 = dma.vmem_to_hbm [thread:$0]  %s882_s2, 128, %s1370_s8, [#allocation4]  }
 0x419   :  { %1071 = dma.done.wait [#allocation4], 128  }
 0x41a   :  { %1072 = vsyncadd [#allocation4], 4294967168 }
 0x41b   :  { %1073 = dma.done.wait [#allocation6], 128  }
 0x41c   :  { %1074 = vsyncadd [#allocation6], 4294967168 }
 0x41d   :  { %901 = vsyncpa [#allocation4], 1 }
 0x41e   :  { %902 = vsyncpa [#allocation6], 1 }

</bundles_post_ra>
